<compile_context>
chip_gen: v7x
topology: tpu7x:2x2x1
jax: 0.10.0
libtpu: 0.0.40
codegen_flags: <defaults>
</compile_context>

<pallas_src>
import functools

import jax
import jax.numpy as jnp
import numpy as np
from jax.experimental import pallas as pl
from jax.experimental.pallas import tpu as pltpu


def _bigram_kernel(tok_ref, w_ref, out_ref):
    # tok_ref: (TR, G)  int32 -- packed column ids (token_id + g*V; -1 if invalid)
    # w_ref:   (P, P)   f32   -- block-diagonal packed embedding table, P = G*V
    # out_ref: (TR, P)  f32   -- lane-dense packed logits
    tr, g_count = tok_ref.shape
    p = w_ref.shape[1]

    tok = tok_ref[...]                                          # (TR, G)
    col = jax.lax.broadcasted_iota(jnp.int32, (tr, p), 1)       # (TR, P)

    # One bool compare per group, combined with OR, single convert at the end.
    hit = col == tok[:, 0:1]
    for g in range(1, g_count):
        hit = hit | (col == tok[:, g:g + 1])
    onehot = hit.astype(w_ref.dtype)                            # (TR, P)

    out_ref[...] = jnp.dot(onehot, w_ref[...],
                           preferred_element_type=jnp.float32)


def _round_up(x, m):
    return ((x + m - 1) // m) * m


@functools.partial(jax.jit, static_argnames=("target_rows",))
def chess_bigram_forward(x, embedding_weight, *, target_rows=4096):
    """x: (B, T) int token ids; embedding_weight: (V, V) float32.

    Returns logits of shape (B, T, V) float32, matching
    nn.Embedding(len(vocab), len(vocab))(x)."""
    B, T = x.shape
    V = embedding_weight.shape[0]
    N = B * T

    # Pack G tokens per output row so the kernel's output last dim is ~128 lanes.
    G = max(1, 128 // V)
    P = G * V

    R = pl.cdiv(N, G)                                   # packed rows needed
    num_tiles = max(1, pl.cdiv(R, target_rows))         # no forced multi-step grid
    tile_rows = _round_up(pl.cdiv(R, num_tiles), 8)     # sublane-aligned
    R_pad = tile_rows * num_tiles
    N_pad = R_pad * G

    tok = x.reshape(N).astype(jnp.int32)
    tok = jnp.pad(tok, (0, N_pad - N))                  # pad with token 0; sliced off below
    tok = tok.reshape(R_pad, G)

    # Validate + pre-offset once here (tiny array, one XLA pass):
    #   valid ids  -> token + g*V  (column index into the packed table)
    #   invalid ids -> -1          (matches no column -> all-zero logits)
    valid = (tok >= 0) & (tok < V)
    offsets = (jnp.arange(G, dtype=jnp.int32) * V)[None, :]
    tok = jnp.where(valid, tok + offsets, jnp.int32(-1))

    w = embedding_weight.astype(jnp.float32)
    # Block-diagonal packed table: W_packed[g*V:(g+1)*V, g*V:(g+1)*V] = W.
    w_packed = jnp.kron(jnp.eye(G, dtype=w.dtype), w)   # (P, P)

    cost = pl.CostEstimate(
        flops=2 * R_pad * P * P,
        transcendentals=0,
        bytes_accessed=R_pad * G * 4 + P * P * 4 + R_pad * P * 4,
    )

    out = pl.pallas_call(
        _bigram_kernel,
        out_shape=jax.ShapeDtypeStruct((R_pad, P), jnp.float32),
        grid_spec=pltpu.PrefetchScalarGridSpec(
            num_scalar_prefetch=0,
            grid=(num_tiles,),
            in_specs=[
                pl.BlockSpec((tile_rows, G), lambda i: (i, 0)),  # packed token ids
                pl.BlockSpec((P, P), lambda i: (0, 0)),          # packed table (constant block)
            ],
            out_specs=pl.BlockSpec((tile_rows, P), lambda i: (i, 0)),
        ),
        compiler_params=pltpu.CompilerParams(
            dimension_semantics=("parallel",),
            vmem_limit_bytes=32 * 1024 * 1024,          # covers v5e's 16 MiB scoped default
        ),
        cost_estimate=cost,
    )(tok, w_packed)

    # (R_pad, G*V) -> (R_pad*G, V) is a contiguous (no-copy) reshape; drop padding.
    return out.reshape(R_pad * G, V)[:N].reshape(B, T, V)


if __name__ == "__main__":
    # Deterministic setup consistent with the module: vocab size 32.
    V = 32
    key = jax.random.PRNGKey(0)
    k_w, k_x1, k_x2, k_x3 = jax.random.split(key, 4)

    # nn.Embedding default init ~ N(0, 1)
    embedding_weight = jax.random.normal(k_w, (V, V), dtype=jnp.float32)

    def ref(x):
        return jnp.take(embedding_weight, x.reshape(-1), axis=0).reshape(*x.shape, V)

    # Small shape: batch=2, seq=8.
    x_small = jax.random.randint(k_x1, (2, 8), 0, V, dtype=jnp.int32)
    logits_small = jax.block_until_ready(chess_bigram_forward(x_small, embedding_weight))
    np.testing.assert_allclose(np.asarray(logits_small), np.asarray(ref(x_small)),
                               rtol=1e-6, atol=1e-6)

    # Ragged shape exercising wrapper padding.
    x_rag = jax.random.randint(k_x2, (4, 37), 0, V, dtype=jnp.int32)
    logits_rag = jax.block_until_ready(chess_bigram_forward(x_rag, embedding_weight))
    np.testing.assert_allclose(np.asarray(logits_rag), np.asarray(ref(x_rag)),
                               rtol=1e-6, atol=1e-6)

    # Moderate shape exercising the multi-tile grid path (2 grid steps at 4096 rows).
    x_big = jax.random.randint(k_x3, (32, 520), 0, V, dtype=jnp.int32)
    logits_big = jax.block_until_ready(chess_bigram_forward(x_big, embedding_weight))
    np.testing.assert_allclose(np.asarray(logits_big), np.asarray(ref(x_big)),
                               rtol=1e-6, atol=1e-6)

    print("KERNEL_OK")
</pallas_src>

<mosaic_0001>
module attributes {stable_mosaic.version = 11 : i64} {
  func.func @_bigram_kernel(%arg0: i32, %arg1: memref<8x4xi32, #tpu.memory_space<vmem>>, %arg2: memref<128x128xf32, #tpu.memory_space<vmem>>, %arg3: memref<8x128xf32, #tpu.memory_space<vmem>>) attributes {dimension_semantics = [#tpu.dimension_semantics<parallel>], iteration_bounds = array<i64: 1>, scalar_prefetch = 0 : i64, scratch_operands = 0 : i64, tpu.core_type = #tpu.core_type<tc>, window_params = [{transform_indices = @transform_0, window_bounds = array<i64: 8, 4>}, {pipeline_mode = #tpu.pipeline_mode<synchronous>, transform_indices = @transform_1, window_bounds = array<i64: 128, 128>}, {transform_indices = @transform_2, window_bounds = array<i64: 8, 128>}]} {
    %c0 = arith.constant 0 : index
    %c0_0 = arith.constant 0 : index
    %0 = vector.load %arg1[%c0, %c0_0] : memref<8x4xi32, #tpu.memory_space<vmem>>, vector<8x4xi32>
    %1 = tpu.iota {dimensions = array<i32: 1>} : vector<8x128xi32>
    %2 = vector.extract_strided_slice %0 {offsets = [0, 0], sizes = [8, 1], strides = [1, 1]} : vector<8x4xi32> to vector<8x1xi32>
    %3 = vector.broadcast %2 : vector<8x1xi32> to vector<8x128xi32>
    %4 = arith.cmpi eq, %1, %3 : vector<8x128xi32>
    %5 = vector.extract_strided_slice %0 {offsets = [0, 1], sizes = [8, 1], strides = [1, 1]} : vector<8x4xi32> to vector<8x1xi32>
    %6 = vector.broadcast %5 : vector<8x1xi32> to vector<8x128xi32>
    %7 = arith.cmpi eq, %1, %6 : vector<8x128xi32>
    %8 = arith.ori %4, %7 : vector<8x128xi1>
    %9 = vector.extract_strided_slice %0 {offsets = [0, 2], sizes = [8, 1], strides = [1, 1]} : vector<8x4xi32> to vector<8x1xi32>
    %10 = vector.broadcast %9 : vector<8x1xi32> to vector<8x128xi32>
    %11 = arith.cmpi eq, %1, %10 : vector<8x128xi32>
    %12 = arith.ori %8, %11 : vector<8x128xi1>
    %13 = vector.extract_strided_slice %0 {offsets = [0, 3], sizes = [8, 1], strides = [1, 1]} : vector<8x4xi32> to vector<8x1xi32>
    %14 = vector.broadcast %13 : vector<8x1xi32> to vector<8x128xi32>
    %15 = arith.cmpi eq, %1, %14 : vector<8x128xi32>
    %16 = arith.ori %12, %15 : vector<8x128xi1>
    %17 = arith.extui %16 : vector<8x128xi1> to vector<8x128xi32>
    %18 = arith.sitofp %17 : vector<8x128xi32> to vector<8x128xf32>
    %c0_1 = arith.constant 0 : index
    %c0_2 = arith.constant 0 : index
    %19 = vector.load %arg2[%c0_1, %c0_2] : memref<128x128xf32, #tpu.memory_space<vmem>>, vector<128x128xf32>
    %cst = arith.constant dense<0.000000e+00> : vector<8x128xf32>
    %20 = tpu.matmul %18, %19, %cst {dimension_numbers = #tpu.dot_dimension_numbers<[1], [0], [0], [1], [0, 0, 1, 1], [], []>} : vector<8x128xf32>, vector<128x128xf32>, vector<8x128xf32> -> vector<8x128xf32>
    %c0_3 = arith.constant 0 : index
    %c0_4 = arith.constant 0 : index
    %21 = vector.load %arg3[%c0_3, %c0_4] : memref<8x128xf32, #tpu.memory_space<vmem>>, vector<8x128xf32>
    tpu.vector_store %arg3[%c0_3, %c0_4], %20 {strides = array<i32>} : memref<8x128xf32, #tpu.memory_space<vmem>>, vector<8x128xf32>,
    return
  }
  func.func @transform_0(%arg0: i32) -> (i32, i32) {
    %c0_i32 = arith.constant 0 : i32
    %c0_i32_0 = arith.constant 0 : i32
    return %arg0, %c0_i32 : i32, i32
  }
  func.func @transform_1(%arg0: i32) -> (i32, i32) {
    %c0_i32 = arith.constant 0 : i32
    %c0_i32_0 = arith.constant 0 : i32
    %c0_i32_1 = arith.constant 0 : i32
    return %c0_i32, %c0_i32_0 : i32, i32
  }
  func.func @transform_2(%arg0: i32) -> (i32, i32) {
    %c0_i32 = arith.constant 0 : i32
    %c0_i32_0 = arith.constant 0 : i32
    return %arg0, %c0_i32 : i32, i32
  }
}

</mosaic_0001>

<bundles_post_ra>
// kernel: chess_bigram_forward.1
= control target key start
LH: loop header
LB: loop body
LE: loop exit
PB: predicated region body
PF: predicated region fallthrough
CT: control target
= control target key end

     0   :  { %v217_v0 = vmov 0   ;;  %v218_v2 = vmov 2   ;;  %v219_v8 = vmov 0.0|0.0   ;;  %v220_v12 = vmov 1   ;;  %s294_s0 = inlined_call_operand.vmem [shape: s32[8,4], index: 0, kind: input, shape index: {}]   ;;  %s295_s1 = inlined_call_operand.vmem [shape: f32[128,128], index: 1, kind: input, shape index: {}]   ;;  %s296_s2 = inlined_call_operand.vmem [shape: f32[8,128], index: 2, kind: output, shape index: {}]  }
   0x1   :  { %212 = vset.pattern.permute.xlu0 %v217_v0  ;;  %v11_v1 = vld [vmem:[%s294_s0] sm:$0xff]  ;;  %214 = vset.pattern.permute.xlu1 %v218_v2  ;;  %v36_v4 = vld [vmem:[%s295_s1 + $0x8] sm:$0xff]  ;;  %v37_v6 = vld [vmem:[%s295_s1 + $0x10] sm:$0xff]  ;;  %v221_v13 = vmov 3   ;;  %vm222_vm0 = vmmov 0   ;;  %v223_v17 = vmov 0.0   ;;  %v12_v31 = vlaneseq }
   0x2   :  { %v35_v3 = vld [vmem:[%s295_s1] sm:$0xff]  ;;  %15 = vperm.xlu0 %212, %v11_v1   ;;  %24 = vperm.xlu1 %214, %v11_v1   ;;  %v38_v7 = vld [vmem:[%s295_s1 + $0x18] sm:$0xff]  ;;  %v40_v11 = vld [vmem:[%s295_s1 + $0x28] sm:$0xff]  ;;  %v224_v37 = vmov 1.0  }
   0x3   :  { %v181_v5 = vpack.c.bf16 %v36_v4, %v35_v3  ;;  %180 = vmatprep.subr.bf16.mxu0 %v219_v8  ;;  %v184_v9 = vpack.c.bf16 %v38_v7, %v37_v6  ;;  %v39_v10 = vld [vmem:[%s295_s1 + $0x20] sm:$0xff]  ;;  %v41_v15 = vld [vmem:[%s295_s1 + $0x30] sm:$0xff]  ;;  %v42_v16 = vld [vmem:[%s295_s1 + $0x38] sm:$0xff]  ;;  %177 = vmatprep.mubr.msk.f32.mxu0 %vm222_vm0, %v223_v17  ;;  %v13_v34 = vand.u32 127, %v12_v31 }
   0x4   :  { %v187_v14 = vpack.c.bf16 %v40_v11, %v39_v10  ;;  %v190_v18 = vpack.c.bf16 %v42_v16, %v41_v15  ;;  %v43_v19 = vld [vmem:[%s295_s1 + $0x40] sm:$0xff]  ;;  %v44_v20 = vld [vmem:[%s295_s1 + $0x48] sm:$0xff]  ;;  %v45_v22 = vld [vmem:[%s295_s1 + $0x50] sm:$0xff] }
   0x5   :  { %182 = vmatpush3.bf16.msra.mxu0 %v181_v5  ;;  %v193_v21 = vpack.c.bf16 %v44_v20, %v43_v19  ;;  %v46_v23 = vld [vmem:[%s295_s1 + $0x58] sm:$0xff]  ;;  %v47_v25 = vld [vmem:[%s295_s1 + $0x60] sm:$0xff]  ;;  %v48_v26 = vld [vmem:[%s295_s1 + $0x68] sm:$0xff] }
   0x6   :  { %183 = vmatprep.subr.bf16.mxu0 %v219_v8  ;;  %213 = vset.pattern.permute.xlu0 %v220_v12  ;;  %v196_v24 = vpack.c.bf16 %v46_v23, %v45_v22  ;;  %v199_v27 = vpack.c.bf16 %v48_v26, %v47_v25  ;;  %v49_v28 = vld [vmem:[%s295_s1 + $0x70] sm:$0xff]  ;;  %v50_v29 = vld [vmem:[%s295_s1 + $0x78] sm:$0xff] }
   0x7   :  { %215 = vset.pattern.permute.xlu1 %v221_v13  ;;  %19 = vperm.xlu0 %213, %v11_v1   ;;  %v202_v30 = vpack.c.bf16 %v50_v29, %v49_v28 }
   0x8   :  { %29 = vperm.xlu1 %215, %v11_v1  }
   0x9   :  { %185 = vmatpush3.bf16.msra.mxu0 %v184_v9 }
   0xa   :  { %186 = vmatprep.subr.bf16.mxu0 %v219_v8 }
   0xb   :  { %216 = vset.pattern.permute.xlu0 %v221_v13 }
   0xd   :  { %188 = vmatpush3.bf16.msra.mxu0 %v187_v14 }
   0xe   :  { %189 = vmatprep.subr.bf16.mxu0 %v219_v8 }
  0x11   :  { %191 = vmatpush3.bf16.msra.mxu0 %v190_v18 }
  0x12   :  { %192 = vmatprep.subr.bf16.mxu0 %v219_v8 }
  0x15   :  { %194 = vmatpush3.bf16.msra.mxu0 %v193_v21 }
  0x16   :  { %195 = vmatprep.subr.bf16.mxu0 %v219_v8 }
  0x19   :  { %197 = vmatpush3.bf16.msra.mxu0 %v196_v24 }
  0x1a   :  { %198 = vmatprep.subr.bf16.mxu0 %v219_v8 }
  0x1d   :  { %200 = vmatpush3.bf16.msra.mxu0 %v199_v27 }
  0x1e   :  { %201 = vmatprep.subr.bf16.mxu0 %v219_v8 }
  0x21   :  { %203 = vmatpush3.bf16.msra.mxu0 %v202_v30 }
  0x81   :  { %v16_v32 = vpop.permute.xlu0 %15  ;;  %v25_v33 = vpop.permute.xlu1 %24 }
  0x82   :  { %vm17_vm1 = vcmp.eq.s32.totalorder %v13_v34, %v16_v32  ;;  %vm26_vm4 = vcmp.eq.s32.totalorder %v13_v34, %v25_v33 }
  0x86   :  { %v20_v35 = vpop.permute.xlu0 %19 }
  0x87   :  { %v30_v36 = vpop.permute.xlu1 %29  ;;  %vm21_vm2 = vcmp.eq.s32.totalorder %v13_v34, %v20_v35 }
  0x88   :  { %vm31_vm3 = vcmp.eq.s32.totalorder %v13_v34, %v30_v36  ;;  %vm22_vm5 = vmor %vm17_vm1, %vm21_vm2 }
  0x89   :  { %vm27_vm6 = vmor %vm22_vm5, %vm26_vm4 }
  0x8a   :  { %vm32_vm7 = vmor %vm27_vm6, %vm31_vm3 }
  0x8b   :  { %178 = vmatmul.mubr.msk.f32.vlgmr.msra.gmra.mrb[0].mxu0 %vm32_vm7, %v224_v37 }
 0x15e   :  { %v117_v38 = vpop.f32.mrb[0].mxu0 }
 0x15f   :  { %121 = vst [vmem:[%s296_s2] sm:$0xff] %v117_v38  ;;  %v179_v39 = vpop.f32.mrb[1].mxu0 }

</bundles_post_ra>
